<compile_context>
chip_gen: v7x
topology: tpu7x:2x2x1
jax: 0.10.0
libtpu: 0.0.40
codegen_flags: <defaults>
</compile_context>

<pallas_src>
import functools

import jax
import jax.numpy as jnp
from jax.experimental import pallas as pl
from jax.experimental.pallas import tpu as pltpu


def _convt_leaky_kernel(x_ref, w_ref, o_ref, *, offsets, cout, sp, batch):
    # x_ref: (B, Cin, Lflat)      zero-padded, flattened images (lane-dense, Lflat % 128 == 0)
    # w_ref: (k*k*Cout, Cin)      flipped transposed-conv taps, one resident slab
    # o_ref: (B, Cout, SP)        lane-dense output tiles (SP % 128 == 0)
    w = w_ref[...]                                     # resident across grid steps
    for b in range(batch):                             # short static unroll (B <= 4)
        # One MXU dot per image on the UNSHIFTED input (tile-aligned RHS).
        y = jnp.dot(w, x_ref[b], preferred_element_type=jnp.float32)   # (k*k*Cout, Lflat)
        # Tap combine: shifts act on the small 12-sublane result, not the input.
        acc = y[0:cout, offsets[0]:offsets[0] + sp]
        for t in range(1, len(offsets)):
            off = offsets[t]
            acc = acc + y[t * cout:(t + 1) * cout, off:off + sp]
        # g2 = acc > 0 ; g3 = acc * -0.25 ; g4 = where(g2, acc, g3)  (fused on VPU)
        o_ref[b] = jnp.where(acc > 0, acc, acc * -0.25).astype(o_ref.dtype)


def conv_transpose_leaky(x_nchw, w, *, images_per_step=4):
    """x_nchw: (N, Cin, H, W) f32; w: (Cin, Cout, kh, kw) ConvTranspose2d weight."""
    N, Cin, H, W = x_nchw.shape
    Cin_w, Cout, kh, kw = w.shape
    assert Cin == Cin_w and kh == kw
    k = kh
    Hout, Wout = H + k - 1, W + k - 1                  # stride=1, padding=0
    Hpad, Wpad = H + 2 * (k - 1), W + 2 * (k - 1)
    S = Hpad * Wpad                                    # padded-grid positions / image
    SP = pl.cdiv(S, 128) * 128                         # lane-dense per-image output width
    halo = (k - 1) * Wpad + (k - 1)                    # largest tap offset
    # Kernel reads result lanes up to SP + halo; pad the flat axis (with zeros)
    # up to a 128-multiple covering that, so all reads stay in-bounds and the
    # MXU RHS / loads are tile-aligned.
    Lflat = pl.cdiv(SP + halo, 128) * 128

    # Images per grid step: amortise per-step overhead, but keep >= 2 parallel
    # grid steps whenever N >= 2 so both v7x TensorCores get work.
    B = max(1, min(images_per_step, pl.cdiv(N, 2)))
    Nb = pl.cdiv(N, B)
    Npad = Nb * B

    # Single spatial zero-pad + free reshape + flat/batch zero-pad (fused by XLA).
    x_flat = jnp.pad(
        x_nchw, ((0, 0), (0, 0), (k - 1, k - 1), (k - 1, k - 1))
    ).reshape(N, Cin, S)
    x_flat = jnp.pad(x_flat, ((0, Npad - N), (0, 0), (0, Lflat - S)))

    # Flipped taps as ONE lane-dense slab: w12[t*Cout + o, c] = w[c, o, k-1-p, k-1-q],
    # t = p*k + q   (transposed conv == correlation of padded input with flipped kernel)
    w12 = jnp.transpose(w[:, :, ::-1, ::-1], (2, 3, 1, 0)).reshape(k * k * Cout, Cin)

    offsets = tuple(p * Wpad + q for p in range(k) for q in range(k))
    kernel = functools.partial(
        _convt_leaky_kernel, offsets=offsets, cout=Cout, sp=SP, batch=B)

    cost = pl.CostEstimate(
        flops=2 * (k * k * Cout) * Cin * Lflat * Npad,
        transcendentals=0,
        bytes_accessed=(Npad * Cin * Lflat + Npad * Cout * SP + w12.size) * 4,
    )

    out = pl.pallas_call(
        kernel,
        out_shape=jax.ShapeDtypeStruct((Npad, Cout, SP), x_nchw.dtype),
        grid=(Nb,),
        in_specs=[
            pl.BlockSpec((B, Cin, Lflat), lambda n: (n, 0, 0)),
            pl.BlockSpec((k * k * Cout, Cin), lambda n: (0, 0)),   # resident weights
        ],
        out_specs=pl.BlockSpec((B, Cout, SP), lambda n: (n, 0, 0)),
        compiler_params=pltpu.CompilerParams(dimension_semantics=("parallel",)),
        cost_estimate=cost,
    )(x_flat, w12)

    # Crop back to the valid window (padded-grid columns j >= Wout are wrap-around
    # garbage and MUST be dropped), and drop batch padding.  Already NCHW.
    out = out[:N, :, :S].reshape(N, Cout, Hpad, Wpad)[:, :, :Hout, :Wout]
    return out


if __name__ == "__main__":
    key = jax.random.PRNGKey(0)
    kx, kw_ = jax.random.split(key)

    # Cin=78 / Cout=3 / k=2 are fixed by the module; batch & spatial kept small.
    # N=5 exercises the multi-image-per-step path (B=3) plus batch padding.
    N, Cin, H, W = 5, 78, 16, 12
    Cout, k = 3, 2
    x3 = jax.random.normal(kx, (N, Cin, H, W), dtype=jnp.float32)
    w = jax.random.normal(kw_, (Cin, Cout, k, k), dtype=jnp.float32) * 0.1

    fwd = jax.jit(conv_transpose_leaky)
    out = jax.block_until_ready(fwd(x3, w))
    assert out.shape == (N, Cout, H + k - 1, W + k - 1), out.shape

    # Pure-JAX reference (full-precision f32 conv, no Pallas).
    x_nhwc = jnp.transpose(x3, (0, 2, 3, 1))
    x_pad = jnp.pad(x_nhwc, ((0, 0), (k - 1, k - 1), (k - 1, k - 1), (0, 0)))
    w_flip = jnp.transpose(w[:, :, ::-1, ::-1], (2, 3, 0, 1))      # (kh, kw, Cin, Cout)
    ref = jax.lax.conv_general_dilated(
        x_pad, w_flip, window_strides=(1, 1), padding="VALID",
        dimension_numbers=("NHWC", "HWIO", "NHWC"),
        precision=jax.lax.Precision.HIGHEST)
    ref = jnp.where(ref > 0, ref, ref * -0.25)
    ref = jnp.transpose(ref, (0, 3, 1, 2))

    max_err = float(jnp.max(jnp.abs(out - ref)))
    assert jnp.allclose(out, ref, atol=2e-4, rtol=2e-4), max_err

    print("KERNEL_OK")
</pallas_src>

<mosaic_0001>
module attributes {stable_mosaic.version = 11 : i64} {
  func.func @_convt_leaky_kernel(%arg0: i32, %arg1: memref<3x78x384xf32, #tpu.memory_space<vmem>>, %arg2: memref<12x78xf32, #tpu.memory_space<vmem>>, %arg3: memref<3x3x256xf32, #tpu.memory_space<vmem>>) attributes {dimension_semantics = [#tpu.dimension_semantics<parallel>], iteration_bounds = array<i64: 2>, scalar_prefetch = 0 : i64, scratch_operands = 0 : i64, tpu.core_type = #tpu.core_type<tc>, window_params = [{transform_indices = @transform_0, window_bounds = array<i64: 3, 78, 384>}, {pipeline_mode = #tpu.pipeline_mode<synchronous>, transform_indices = @transform_1, window_bounds = array<i64: 12, 78>}, {transform_indices = @transform_2, window_bounds = array<i64: 3, 3, 256>}]} {
    %c0 = arith.constant 0 : index
    %c0_0 = arith.constant 0 : index
    %0 = vector.load %arg2[%c0, %c0_0] : memref<12x78xf32, #tpu.memory_space<vmem>>, vector<12x78xf32>
    %c0_1 = arith.constant 0 : index
    %c0_2 = arith.constant 0 : index
    %c0_3 = arith.constant 0 : index
    %1 = vector.load %arg1[%c0_1, %c0_2, %c0_3] : memref<3x78x384xf32, #tpu.memory_space<vmem>>, vector<1x78x384xf32>
    %2 = vector.shape_cast %1 : vector<1x78x384xf32> to vector<78x384xf32>
    %cst = arith.constant dense<0.000000e+00> : vector<12x384xf32>
    %3 = tpu.matmul %0, %2, %cst {dimension_numbers = #tpu.dot_dimension_numbers<[1], [0], [0], [1], [0, 0, 1, 1], [], []>} : vector<12x78xf32>, vector<78x384xf32>, vector<12x384xf32> -> vector<12x384xf32>
    %4 = vector.extract_strided_slice %3 {offsets = [0, 0], sizes = [3, 256], strides = [1, 1]} : vector<12x384xf32> to vector<3x256xf32>
    %5 = vector.extract_strided_slice %3 {offsets = [3, 1], sizes = [3, 256], strides = [1, 1]} : vector<12x384xf32> to vector<3x256xf32>
    %6 = arith.addf %4, %5 : vector<3x256xf32>
    %7 = vector.extract_strided_slice %3 {offsets = [6, 14], sizes = [3, 256], strides = [1, 1]} : vector<12x384xf32> to vector<3x256xf32>
    %8 = arith.addf %6, %7 : vector<3x256xf32>
    %9 = vector.extract_strided_slice %3 {offsets = [9, 15], sizes = [3, 256], strides = [1, 1]} : vector<12x384xf32> to vector<3x256xf32>
    %10 = arith.addf %8, %9 : vector<3x256xf32>
    %cst_4 = arith.constant 0.000000e+00 : f32
    %11 = vector.broadcast %cst_4 : f32 to vector<3x256xf32>
    %12 = arith.cmpf ogt, %10, %11 : vector<3x256xf32>
    %cst_5 = arith.constant -2.500000e-01 : f32
    %13 = vector.broadcast %cst_5 : f32 to vector<3x256xf32>
    %14 = arith.mulf %10, %13 : vector<3x256xf32>
    %15 = arith.select %12, %10, %14 : vector<3x256xi1>, vector<3x256xf32>
    %c0_6 = arith.constant 0 : index
    %c0_7 = arith.constant 0 : index
    %c0_8 = arith.constant 0 : index
    %16 = vector.load %arg3[%c0_6, %c0_7, %c0_8] : memref<3x3x256xf32, #tpu.memory_space<vmem>>, vector<1x3x256xf32>
    %17 = vector.shape_cast %16 : vector<1x3x256xf32> to vector<3x256xf32>
    %18 = vector.shape_cast %15 : vector<3x256xf32> to vector<1x3x256xf32>
    tpu.vector_store %arg3[%c0_6, %c0_7, %c0_8], %18 {strides = array<i32>} : memref<3x3x256xf32, #tpu.memory_space<vmem>>, vector<1x3x256xf32>,
    %c1 = arith.constant 1 : index
    %c0_9 = arith.constant 0 : index
    %c0_10 = arith.constant 0 : index
    %19 = vector.load %arg1[%c1, %c0_9, %c0_10] : memref<3x78x384xf32, #tpu.memory_space<vmem>>, vector<1x78x384xf32>
    %20 = vector.shape_cast %19 : vector<1x78x384xf32> to vector<78x384xf32>
    %cst_11 = arith.constant dense<0.000000e+00> : vector<12x384xf32>
    %21 = tpu.matmul %0, %20, %cst_11 {dimension_numbers = #tpu.dot_dimension_numbers<[1], [0], [0], [1], [0, 0, 1, 1], [], []>} : vector<12x78xf32>, vector<78x384xf32>, vector<12x384xf32> -> vector<12x384xf32>
    %22 = vector.extract_strided_slice %21 {offsets = [0, 0], sizes = [3, 256], strides = [1, 1]} : vector<12x384xf32> to vector<3x256xf32>
    %23 = vector.extract_strided_slice %21 {offsets = [3, 1], sizes = [3, 256], strides = [1, 1]} : vector<12x384xf32> to vector<3x256xf32>
    %24 = arith.addf %22, %23 : vector<3x256xf32>
    %25 = vector.extract_strided_slice %21 {offsets = [6, 14], sizes = [3, 256], strides = [1, 1]} : vector<12x384xf32> to vector<3x256xf32>
    %26 = arith.addf %24, %25 : vector<3x256xf32>
    %27 = vector.extract_strided_slice %21 {offsets = [9, 15], sizes = [3, 256], strides = [1, 1]} : vector<12x384xf32> to vector<3x256xf32>
    %28 = arith.addf %26, %27 : vector<3x256xf32>
    %cst_12 = arith.constant 0.000000e+00 : f32
    %29 = vector.broadcast %cst_12 : f32 to vector<3x256xf32>
    %30 = arith.cmpf ogt, %28, %29 : vector<3x256xf32>
    %cst_13 = arith.constant -2.500000e-01 : f32
    %31 = vector.broadcast %cst_13 : f32 to vector<3x256xf32>
    %32 = arith.mulf %28, %31 : vector<3x256xf32>
    %33 = arith.select %30, %28, %32 : vector<3x256xi1>, vector<3x256xf32>
    %c1_14 = arith.constant 1 : index
    %c0_15 = arith.constant 0 : index
    %c0_16 = arith.constant 0 : index
    %34 = vector.load %arg3[%c1_14, %c0_15, %c0_16] : memref<3x3x256xf32, #tpu.memory_space<vmem>>, vector<1x3x256xf32>
    %35 = vector.shape_cast %34 : vector<1x3x256xf32> to vector<3x256xf32>
    %36 = vector.shape_cast %33 : vector<3x256xf32> to vector<1x3x256xf32>
    tpu.vector_store %arg3[%c1_14, %c0_15, %c0_16], %36 {strides = array<i32>} : memref<3x3x256xf32, #tpu.memory_space<vmem>>, vector<1x3x256xf32>,
    %c2 = arith.constant 2 : index
    %c0_17 = arith.constant 0 : index
    %c0_18 = arith.constant 0 : index
    %37 = vector.load %arg1[%c2, %c0_17, %c0_18] : memref<3x78x384xf32, #tpu.memory_space<vmem>>, vector<1x78x384xf32>
    %38 = vector.shape_cast %37 : vector<1x78x384xf32> to vector<78x384xf32>
    %cst_19 = arith.constant dense<0.000000e+00> : vector<12x384xf32>
    %39 = tpu.matmul %0, %38, %cst_19 {dimension_numbers = #tpu.dot_dimension_numbers<[1], [0], [0], [1], [0, 0, 1, 1], [], []>} : vector<12x78xf32>, vector<78x384xf32>, vector<12x384xf32> -> vector<12x384xf32>
    %40 = vector.extract_strided_slice %39 {offsets = [0, 0], sizes = [3, 256], strides = [1, 1]} : vector<12x384xf32> to vector<3x256xf32>
    %41 = vector.extract_strided_slice %39 {offsets = [3, 1], sizes = [3, 256], strides = [1, 1]} : vector<12x384xf32> to vector<3x256xf32>
    %42 = arith.addf %40, %41 : vector<3x256xf32>
    %43 = vector.extract_strided_slice %39 {offsets = [6, 14], sizes = [3, 256], strides = [1, 1]} : vector<12x384xf32> to vector<3x256xf32>
    %44 = arith.addf %42, %43 : vector<3x256xf32>
    %45 = vector.extract_strided_slice %39 {offsets = [9, 15], sizes = [3, 256], strides = [1, 1]} : vector<12x384xf32> to vector<3x256xf32>
    %46 = arith.addf %44, %45 : vector<3x256xf32>
    %cst_20 = arith.constant 0.000000e+00 : f32
    %47 = vector.broadcast %cst_20 : f32 to vector<3x256xf32>
    %48 = arith.cmpf ogt, %46, %47 : vector<3x256xf32>
    %cst_21 = arith.constant -2.500000e-01 : f32
    %49 = vector.broadcast %cst_21 : f32 to vector<3x256xf32>
    %50 = arith.mulf %46, %49 : vector<3x256xf32>
    %51 = arith.select %48, %46, %50 : vector<3x256xi1>, vector<3x256xf32>
    %c2_22 = arith.constant 2 : index
    %c0_23 = arith.constant 0 : index
    %c0_24 = arith.constant 0 : index
    %52 = vector.load %arg3[%c2_22, %c0_23, %c0_24] : memref<3x3x256xf32, #tpu.memory_space<vmem>>, vector<1x3x256xf32>
    %53 = vector.shape_cast %52 : vector<1x3x256xf32> to vector<3x256xf32>
    %54 = vector.shape_cast %51 : vector<3x256xf32> to vector<1x3x256xf32>
    tpu.vector_store %arg3[%c2_22, %c0_23, %c0_24], %54 {strides = array<i32>} : memref<3x3x256xf32, #tpu.memory_space<vmem>>, vector<1x3x256xf32>,
    return
  }
  func.func @transform_0(%arg0: i32) -> (i32, i32, i32) {
    %c0_i32 = arith.constant 0 : i32
    %c0_i32_0 = arith.constant 0 : i32
    %c0_i32_1 = arith.constant 0 : i32
    return %arg0, %c0_i32, %c0_i32_0 : i32, i32, i32
  }
  func.func @transform_1(%arg0: i32) -> (i32, i32) {
    %c0_i32 = arith.constant 0 : i32
    %c0_i32_0 = arith.constant 0 : i32
    %c0_i32_1 = arith.constant 0 : i32
    return %c0_i32, %c0_i32_0 : i32, i32
  }
  func.func @transform_2(%arg0: i32) -> (i32, i32, i32) {
    %c0_i32 = arith.constant 0 : i32
    %c0_i32_0 = arith.constant 0 : i32
    %c0_i32_1 = arith.constant 0 : i32
    return %arg0, %c0_i32, %c0_i32_0 : i32, i32, i32
  }
}

</mosaic_0001>

<bundles_post_ra>
// kernel: conv_transpose_leaky.1
= control target key start
LH: loop header
LB: loop body
LE: loop exit
PB: predicated region body
PF: predicated region fallthrough
CT: control target
= control target key end

     0   :  { %s1378_s9 = smov 0   ;;  %s1648_s0 = inlined_call_operand.vmem [shape: f32[6,78,384], index: 0, kind: input, shape index: {}]   ;;  %s1649_s1 = inlined_call_operand.vmem [shape: f32[12,78], index: 1, kind: input, shape index: {}]   ;;  %s1650_s2 = inlined_call_operand.vmem [shape: f32[6,3,256], index: 2, kind: output, shape index: {}]  }
   0x1 LB: > { %s1005_s10 = sadd.s32 4294967295, %s1356_s9   ;;  %p1009_p0 = scmp.ge.s32.totalorder %s1356_s9, 1  ;;  %s1356_s9 = sphi %s1378_s9, %s12_s9  }
   0x2   : > { %p114_p1 = scmp.lt.s32.totalorder %s1356_s9, 3 }
   0x4   : > { %p115_p2 = pnand %p1009_p0, %p114_p1 }
   0x5   : > { %s138_s11 = smul.u32 (!%p115_p2), 3, %s1005_s10  ;;  %v1389_v0 = vld [vmem:[%s1649_s1] sm:$0xff] (!%p115_p2)  ;;  %vm184_vm0 = vcmask (!%p115_p2), 637952   ;;  %v1358_v1 = vmov (!%p115_p2), 0.0   ;;  %vm191_vm1 = vcmask (!%p115_p2), 1045504   ;;  %vm1359_vm2 = vmmov (!%p115_p2), 1  }
   0x6   : > { %118 = sbr.rel (%p115_p2) target bundleno = 434 (0x1b2), region = 28  ;;  %265 = vmatprep.mubr.f32.mxu0 (!%p115_p2), %v1358_v1  ;;  %1155 = vmatprep.mubr.msk.f32.mxu1 (!%p115_p2), %vm184_vm0, %v1389_v0  ;;  %vm1432_vm3 = vmpackc.low (!%p115_p2), %vm191_vm1, %vm1359_vm2  ;;  %v1457_v61 = vld [vmem:[%s1649_s1 + $0x8] sm:$0xf] (!%p115_p2)  ;;  %vm375_vm4 = vcmask (!%p115_p2), 1041408   ;;  %s1360_s20 = smov (!%p115_p2), 127   ;;  %vm365_vm5 = vcmask (!%p115_p2), 1039360  }
   0x7   : > { %p139_p3 = scmp.lt.s32.totalorder (!%p115_p2), %s138_s11, 5  ;;  %s1361_s21 = smov (!%p115_p2), 113   ;;  %vm391_vm6 = vcmask (!%p115_p2), 932864   ;;  %vm407_vm7 = vcmask (!%p115_p2), 924672  }
   0x8   : > { %s1362_s22 = smov (!%p115_p2), 114  }
   0xd   : > { %s1654_s11 = smov (!%p139_p3, %s138_s11), 5 }
   0xe   : > { %s1336_s14 = smul.u32 240, %s1654_s11  ;;  %s1098_s23 = sshll.u32 %s1654_s11, 3 }
   0xf   : > { %s1624_s26 = scalar_lea.vmem %s1650_s2, %s1098_s23 }
  0x10   : > { %s1400_s17 = scalar_lea.vmem %s1648_s0, %s1336_s14 }
  0x11   : > { %v155_v2 = vld [vmem:[%s1400_s17 + $0x8] sm:$0xff]  ;;  %v158_v3 = vld [vmem:[%s1400_s17 + $0x20] sm:$0xff]  ;;  %v156_v4 = vld [vmem:[%s1400_s17 + $0x10] sm:$0xff] }
  0x12   : > { %v1204_v5 = vpack.c.bf16 %v158_v3, %v155_v2  ;;  %v159_v6 = vld [vmem:[%s1400_s17 + $0x28] sm:$0xff]  ;;  %v154_v7 = vld [vmem:[%s1400_s17] sm:$0xff]  ;;  %v157_v8 = vld [vmem:[%s1400_s17 + $0x18] sm:$0xff] }
  0x13   : > { %v1226_v9 = vpack.c.bf16 %v159_v6, %v156_v4  ;;  %v1206_v10 = vpack.c.bf16 %v157_v8, %v154_v7  ;;  %v161_v11 = vld [vmem:[%s1400_s17 + $0x38] sm:$0xff]  ;;  %v164_v12 = vld [vmem:[%s1400_s17 + $0x50] sm:$0xff]  ;;  %v162_v13 = vld [vmem:[%s1400_s17 + $0x40] sm:$0xff] }
  0x14   : > { %1205 = vmatprep.subr.bf16.mxu0 %v1204_v5  ;;  %v1208_v14 = vpack.c.bf16 %v164_v12, %v161_v11  ;;  %v165_v15 = vld [vmem:[%s1400_s17 + $0x58] sm:$0xff]  ;;  %v160_v16 = vld [vmem:[%s1400_s17 + $0x30] sm:$0xff]  ;;  %v163_v17 = vld [vmem:[%s1400_s17 + $0x48] sm:$0xff] }
  0x15   : > { %1227 = vmatprep.subr.bf16.mxu1 %v1226_v9  ;;  %1207 = vmatpush1.bf16.msra.mxu0 %v1206_v10  ;;  %v1230_v18 = vpack.c.bf16 %v165_v15, %v162_v13  ;;  %v1210_v19 = vpack.c.bf16 %v163_v17, %v160_v16  ;;  %v167_v20 = vld [vmem:[%s1400_s17 + $0x68] sm:$0xff]  ;;  %v170_v21 = vld [vmem:[%s1400_s17 + $0x80] sm:$0xff]  ;;  %v168_v22 = vld [vmem:[%s1400_s17 + $0x70] sm:$0xff] }
  0x16   : > { %1229 = vmatpush3.bf16.msra.mxu1 %v1226_v9  ;;  %1209 = vmatprep.subr.bf16.mxu0 %v1208_v14  ;;  %v1212_v23 = vpack.c.bf16 %v170_v21, %v167_v20  ;;  %v171_v24 = vld [vmem:[%s1400_s17 + $0x88] sm:$0xff]  ;;  %v166_v25 = vld [vmem:[%s1400_s17 + $0x60] sm:$0xff]  ;;  %v169_v26 = vld [vmem:[%s1400_s17 + $0x78] sm:$0xff] }
  0x17   : > { %1231 = vmatprep.subr.bf16.mxu1 %v1230_v18  ;;  %v1234_v27 = vpack.c.bf16 %v171_v24, %v168_v22  ;;  %v173_v28 = vld [vmem:[%s1400_s17 + $0x98] sm:$0xff]  ;;  %v176_v29 = vld [vmem:[%s1400_s17 + $0xb0] sm:$0xff]  ;;  %v174_v30 = vld [vmem:[%s1400_s17 + $0xa0] sm:$0xff]  ;;  %v1214_v32 = vpack.c.bf16 %v169_v26, %v166_v25 }
  0x18   : > { %v177_v31 = vld [vmem:[%s1400_s17 + $0xb8] sm:$0xff]  ;;  %v1216_v33 = vpack.c.bf16 %v176_v29, %v173_v28  ;;  %v172_v34 = vld [vmem:[%s1400_s17 + $0x90] sm:$0xff]  ;;  %v175_v35 = vld [vmem:[%s1400_s17 + $0xa8] sm:$0xff] }
  0x19   : > { %1211 = vmatpush1.bf16.msra.mxu0 %v1210_v19  ;;  %v1238_v36 = vpack.c.bf16 %v177_v31, %v174_v30  ;;  %v179_v37 = vld [vmem:[%s1400_s17 + $0xc8] sm:$0xff]  ;;  %v182_v38 = vld [vmem:[%s1400_s17 + $0xe0] sm:$0x3f]  ;;  %v180_v39 = vld [vmem:[%s1400_s17 + $0xd0] sm:$0xff]  ;;  %v1218_v41 = vpack.c.bf16 %v175_v35, %v172_v34 }
  0x1a   : > { %1233 = vmatpush3.bf16.msra.mxu1 %v1230_v18  ;;  %1213 = vmatprep.subr.bf16.mxu0 %v1212_v23  ;;  %v183_v40 = vld [vmem:[%s1400_s17 + $0xe8] sm:$0x3f]  ;;  %v1220_v42 = vpack.c.bf16 %v182_v38, %v179_v37  ;;  %v178_v43 = vld [vmem:[%s1400_s17 + $0xc0] sm:$0xff]  ;;  %v181_v44 = vld [vmem:[%s1400_s17 + $0xd8] sm:$0x3f] }
  0x1b   : > { %1235 = vmatprep.subr.bf16.mxu1 %v1234_v27  ;;  %v1242_v46 = vpack.c.bf16 %v183_v40, %v180_v39  ;;  %v1021_v47 = vld [vmem:[%s1400_s17 + $0xf8] sm:$0xff]  ;;  %v1024_v48 = vld [vmem:[%s1400_s17 + $0x110] sm:$0xff]  ;;  %v1022_v49 = vld [vmem:[%s1400_s17 + $0x100] sm:$0xff]  ;;  %v1223_v51 = vpack.c.bf16 %v181_v44, %v178_v43 }
  0x1c   : > { %v1025_v50 = vld [vmem:[%s1400_s17 + $0x118] sm:$0xff]  ;;  %v1248_v52 = vpack.c.bf16 %v1024_v48, %v1021_v47  ;;  %v1020_v53 = vld [vmem:[%s1400_s17 + $0xf0] sm:$0xff]  ;;  %v1023_v54 = vld [vmem:[%s1400_s17 + $0x108] sm:$0xff] }
  0x1d   : > { %1215 = vmatpush1.bf16.msra.mxu0 %v1214_v32  ;;  %v1270_v55 = vpack.c.bf16 %v1025_v50, %v1022_v49  ;;  %v1027_v56 = vld [vmem:[%s1400_s17 + $0x128] sm:$0xff]  ;;  %v1030_v57 = vld [vmem:[%s1400_s17 + $0x140] sm:$0xff]  ;;  %v1028_v58 = vld [vmem:[%s1400_s17 + $0x130] sm:$0xff]  ;;  %v1250_v60 = vpack.c.bf16 %v1023_v54, %v1020_v53 }
  0x1e   : > { %1237 = vmatpush3.bf16.msra.mxu1 %v1234_v27  ;;  %1217 = vmatprep.subr.bf16.mxu0 %v1216_v33  ;;  %v1031_v59 = vld [vmem:[%s1400_s17 + $0x148] sm:$0xff]  ;;  %v1026_v62 = vld [vmem:[%s1400_s17 + $0x120] sm:$0xff]  ;;  %v1029_v63 = vld [vmem:[%s1400_s17 + $0x138] sm:$0xff]  ;;  %v1252_v2 = vpack.c.bf16 %v1030_v57, %v1027_v56 }
  0x1f   : > { %1239 = vmatprep.subr.bf16.mxu1 %v1238_v36  ;;  %v1274_v3 = vpack.c.bf16 %v1031_v59, %v1028_v58  ;;  %v1033_v4 = vld [vmem:[%s1400_s17 + $0x158] sm:$0xff]  ;;  %v1036_v5 = vld [vmem:[%s1400_s17 + $0x170] sm:$0xff]  ;;  %v1034_v6 = vld [vmem:[%s1400_s17 + $0x160] sm:$0xff]  ;;  %v1254_v8 = vpack.c.bf16 %v1029_v63, %v1026_v62 }
  0x20   : > { %v1037_v7 = vld [vmem:[%s1400_s17 + $0x178] sm:$0xff]  ;;  %v1256_v9 = vpack.c.bf16 %v1036_v5, %v1033_v4  ;;  %v1032_v10 = vld [vmem:[%s1400_s17 + $0x150] sm:$0xff]  ;;  %v1035_v11 = vld [vmem:[%s1400_s17 + $0x168] sm:$0xff] }
  0x21   : > { %1219 = vmatpush1.bf16.msra.mxu0 %v1218_v41  ;;  %v1278_v12 = vpack.c.bf16 %v1037_v7, %v1034_v6  ;;  %v1039_v13 = vld [vmem:[%s1400_s17 + $0x188] sm:$0xff]  ;;  %v1042_v14 = vld [vmem:[%s1400_s17 + $0x1a0] sm:$0xff]  ;;  %v1040_v15 = vld [vmem:[%s1400_s17 + $0x190] sm:$0xff]  ;;  %v1258_v17 = vpack.c.bf16 %v1035_v11, %v1032_v10 }
  0x22   : > { %1241 = vmatpush3.bf16.msra.mxu1 %v1238_v36  ;;  %1222 = vmatprep.subr.msk.bf16.mxu0 %vm1432_vm3, %v1220_v42  ;;  %v1043_v16 = vld [vmem:[%s1400_s17 + $0x1a8] sm:$0xff]  ;;  %v1260_v18 = vpack.c.bf16 %v1042_v14, %v1039_v13  ;;  %v1038_v19 = vld [vmem:[%s1400_s17 + $0x180] sm:$0xff]  ;;  %v1041_v20 = vld [vmem:[%s1400_s17 + $0x198] sm:$0xff] }
  0x23   : > { %1244 = vmatprep.subr.msk.bf16.mxu1 %vm1432_vm3, %v1242_v46  ;;  %v1282_v21 = vpack.c.bf16 %v1043_v16, %v1040_v15  ;;  %v1045_v22 = vld [vmem:[%s1400_s17 + $0x1b8] sm:$0xff]  ;;  %v1048_v23 = vld [vmem:[%s1400_s17 + $0x1d0] sm:$0x3f]  ;;  %v1046_v24 = vld [vmem:[%s1400_s17 + $0x1c0] sm:$0xff]  ;;  %v1262_v26 = vpack.c.bf16 %v1041_v20, %v1038_v19 }
  0x24   : > { %v1049_v25 = vld [vmem:[%s1400_s17 + $0x1d8] sm:$0x3f]  ;;  %v1264_v27 = vpack.c.bf16 %v1048_v23, %v1045_v22  ;;  %v1044_v28 = vld [vmem:[%s1400_s17 + $0x1b0] sm:$0xff]  ;;  %v1047_v29 = vld [vmem:[%s1400_s17 + $0x1c8] sm:$0x3f] }
  0x25   : > { %1225 = vmatpush1.bf16.msk.msra.mxu0 %vm1432_vm3, %v1223_v51  ;;  %v1286_v30 = vpack.c.bf16 %v1049_v25, %v1046_v24  ;;  %v1059_v31 = vld [vmem:[%s1400_s17 + $0x1e8] sm:$0xff]  ;;  %v1062_v32 = vld [vmem:[%s1400_s17 + $0x200] sm:$0xff]  ;;  %v1060_v33 = vld [vmem:[%s1400_s17 + $0x1f0] sm:$0xff]  ;;  %v1267_v35 = vpack.c.bf16 %v1047_v29, %v1044_v28 }
  0x26   : > { %1247 = vmatpush3.bf16.msk.msra.mxu1 %vm1432_vm3, %v1242_v46  ;;  %1249 = vmatprep.subr.bf16.mxu0 %v1248_v52  ;;  %v1063_v34 = vld [vmem:[%s1400_s17 + $0x208] sm:$0xff]  ;;  %v1292_v36 = vpack.c.bf16 %v1062_v32, %v1059_v31  ;;  %v1058_v37 = vld [vmem:[%s1400_s17 + $0x1e0] sm:$0xff]  ;;  %v1061_v38 = vld [vmem:[%s1400_s17 + $0x1f8] sm:$0xff] }
  0x27   : > { %1271 = vmatprep.subr.bf16.mxu1 %v1270_v55  ;;  %v1314_v39 = vpack.c.bf16 %v1063_v34, %v1060_v33  ;;  %v1065_v40 = vld [vmem:[%s1400_s17 + $0x218] sm:$0xff]  ;;  %v1068_v41 = vld [vmem:[%s1400_s17 + $0x230] sm:$0xff]  ;;  %v1294_v42 = vpack.c.bf16 %v1061_v38, %v1058_v37  ;;  %v1066_v43 = vld [vmem:[%s1400_s17 + $0x220] sm:$0xff] }
  0x28   : > { %1015 = vmatmul.mubr.msk.f32.vlgmr.msra.gmra.mrb[0].mxu0 %vm184_vm0, %v1389_v0  ;;  %v1069_v44 = vld [vmem:[%s1400_s17 + $0x238] sm:$0xff]  ;;  %v1296_v46 = vpack.c.bf16 %v1068_v41, %v1065_v40  ;;  %v1064_v47 = vld [vmem:[%s1400_s17 + $0x210] sm:$0xff]  ;;  %v1067_v48 = vld [vmem:[%s1400_s17 + $0x228] sm:$0xff] }
  0x29   : > { %1156 = vmatmul.mubr.msk.f32.vlgmr.msra.gmra.mrb[0].mxu1 %vm184_vm0, %v1457_v61  ;;  %1251 = vmatpush1.bf16.msra.mxu0 %v1250_v60  ;;  %v1071_v49 = vld [vmem:[%s1400_s17 + $0x248] sm:$0xff]  ;;  %v1074_v50 = vld [vmem:[%s1400_s17 + $0x260] sm:$0xff]  ;;  %v1318_v51 = vpack.c.bf16 %v1069_v44, %v1066_v43  ;;  %v1298_v52 = vpack.c.bf16 %v1067_v48, %v1064_v47  ;;  %v1072_v53 = vld [vmem:[%s1400_s17 + $0x250] sm:$0xff] }
  0x2a   : > { %271 = vmatprep.mubr.f32.mxu0 %v1358_v1  ;;  %1273 = vmatpush3.bf16.msra.mxu1 %v1270_v55  ;;  %v1075_v54 = vld [vmem:[%s1400_s17 + $0x268] sm:$0xff]  ;;  %v1300_v55 = vpack.c.bf16 %v1074_v50, %v1071_v49  ;;  %v1070_v56 = vld [vmem:[%s1400_s17 + $0x240] sm:$0xff]  ;;  %v1073_v57 = vld [vmem:[%s1400_s17 + $0x258] sm:$0xff] }
  0x2b   : > { %1253 = vmatprep.subr.bf16.mxu0 %v1252_v2  ;;  %1275 = vmatprep.subr.bf16.mxu1 %v1274_v3  ;;  %v1077_v58 = vld [vmem:[%s1400_s17 + $0x278] sm:$0xff]  ;;  %v1080_v59 = vld [vmem:[%s1400_s17 + $0x290] sm:$0xff]  ;;  %v1322_v60 = vpack.c.bf16 %v1075_v54, %v1072_v53  ;;  %v1302_v62 = vpack.c.bf16 %v1073_v57, %v1070_v56  ;;  %v1078_v63 = vld [vmem:[%s1400_s17 + $0x280] sm:$0xff] }
  0x2c   : > { %1016 = vmatmul.mubr.msk.f32.gmra.mrb[2].mxu0 %vm184_vm0, %v1457_v61  ;;  %1178 = vmatprep.mubr.msk.f32.mxu1 %vm184_vm0, %v1389_v0  ;;  %v1081_v2 = vld [vmem:[%s1400_s17 + $0x298] sm:$0xff]  ;;  %v1076_v4 = vld [vmem:[%s1400_s17 + $0x270] sm:$0xff]  ;;  %v1079_v5 = vld [vmem:[%s1400_s17 + $0x288] sm:$0xff] }
  0x2d   : > { %1255 = vmatpush1.bf16.msra.mxu0 %v1254_v8  ;;  %529 = vmatprep.mubr.f32.mxu0 %v1358_v1  ;;  %v1083_v6 = vld [vmem:[%s1400_s17 + $0x2a8] sm:$0xff]  ;;  %v1086_v7 = vld [vmem:[%s1400_s17 + $0x2c0] sm:$0x3f]  ;;  %v1326_v8 = vpack.c.bf16 %v1081_v2, %v1078_v63  ;;  %v1084_v10 = vld [vmem:[%s1400_s17 + $0x2b0] sm:$0xff] }
  0x2e   : > { %1277 = vmatpush3.bf16.msra.mxu1 %v1274_v3  ;;  %1257 = vmatprep.subr.bf16.mxu0 %v1256_v9  ;;  %v1304_v3 = vpack.c.bf16 %v1080_v59, %v1077_v58  ;;  %v1306_v9 = vpack.c.bf16 %v1079_v5, %v1076_v4  ;;  %v1087_v11 = vld [vmem:[%s1400_s17 + $0x2c8] sm:$0x3f]  ;;  %v1082_v13 = vld [vmem:[%s1400_s17 + $0x2a0] sm:$0xff]  ;;  %v1085_v14 = vld [vmem:[%s1400_s17 + $0x2b8] sm:$0x3f] }
  0x2f   : > { %1279 = vmatprep.subr.bf16.mxu1 %v1278_v12  ;;  %v1330_v15 = vpack.c.bf16 %v1087_v11, %v1084_v10  ;;  %v1311_v16 = vpack.c.bf16 %v1085_v14, %v1082_v13 }
  0x31   : > { %1259 = vmatpush1.bf16.msra.mxu0 %v1258_v17 }
  0x32   : > { %1281 = vmatpush3.bf16.msra.mxu1 %v1278_v12  ;;  %1261 = vmatprep.subr.bf16.mxu0 %v1260_v18  ;;  %v1308_v12 = vpack.c.bf16 %v1086_v7, %v1083_v6 }
  0x33   : > { %1283 = vmatprep.subr.bf16.mxu1 %v1282_v21 }
  0x35   : > { %1263 = vmatpush1.bf16.msra.mxu0 %v1262_v26 }
  0x36   : > { %1285 = vmatpush3.bf16.msra.mxu1 %v1282_v21  ;;  %1266 = vmatprep.subr.msk.bf16.mxu0 %vm1432_vm3, %v1264_v27 }
  0x37   : > { %1288 = vmatprep.subr.msk.bf16.mxu1 %vm1432_vm3, %v1286_v30 }
  0x39   : > { %1269 = vmatpush1.bf16.msk.msra.mxu0 %vm1432_vm3, %v1267_v35 }
  0x3a   : > { %1291 = vmatpush3.bf16.msk.msra.mxu1 %vm1432_vm3, %v1286_v30  ;;  %1293 = vmatprep.subr.bf16.mxu0 %v1292_v36 }
  0x3b   : > { %1315 = vmatprep.subr.bf16.mxu1 %v1314_v39 }
  0x3c   : > { %1052 = vmatmul.mubr.msk.f32.vlgmr.msra.gmra.mrb[4].mxu0 %vm184_vm0, %v1389_v0 }
  0x3d   : > { %1295 = vmatpush1.bf16.msra.mxu0 %v1294_v42  ;;  %535 = vmatprep.mubr.f32.mxu0 %v1358_v1 }
  0x3e   : > { %1179 = vmatmul.mubr.msk.f32.vlgmr.msra.gmra.mrb[2].mxu1 %vm184_vm0, %v1457_v61  ;;  %1297 = vmatprep.subr.bf16.mxu0 %v1296_v46 }
  0x3f   : > { %1317 = vmatpush3.bf16.msra.mxu1 %v1314_v39  ;;  %1201 = vmatprep.mubr.msk.f32.mxu1 %vm184_vm0, %v1389_v0 }
  0x40   : > { %1053 = vmatmul.mubr.msk.f32.gmra.mrb[6].mxu0 %vm184_vm0, %v1457_v61  ;;  %1319 = vmatprep.subr.bf16.mxu1 %v1318_v51 }
  0x41   : > { %1299 = vmatpush1.bf16.msra.mxu0 %v1298_v52  ;;  %790 = vmatprep.mubr.f32.mxu0 %v1358_v1 }
  0x42   : > { %1301 = vmatprep.subr.bf16.mxu0 %v1300_v55 }
  0x43   : > { %1321 = vmatpush3.bf16.msra.mxu1 %v1318_v51 }
  0x44   : > { %1323 = vmatprep.subr.bf16.mxu1 %v1322_v60 }
  0x45   : > { %1303 = vmatpush1.bf16.msra.mxu0 %v1302_v62 }
  0x46   : > { %1305 = vmatprep.subr.bf16.mxu0 %v1304_v3 }
  0x47   : > { %1325 = vmatpush3.bf16.msra.mxu1 %v1322_v60 }
  0x48   : > { %1327 = vmatprep.subr.bf16.mxu1 %v1326_v8 }
  0x49   : > { %1307 = vmatpush1.bf16.msra.mxu0 %v1306_v9 }
  0x4a   : > { %1310 = vmatprep.subr.msk.bf16.mxu0 %vm1432_vm3, %v1308_v12 }
  0x4b   : > { %1329 = vmatpush3.bf16.msra.mxu1 %v1326_v8 }
  0x4c   : > { %1332 = vmatprep.subr.msk.bf16.mxu1 %vm1432_vm3, %v1330_v15 }
  0x4d   : > { %1313 = vmatpush1.bf16.msk.msra.mxu0 %vm1432_vm3, %v1311_v16 }
  0x4f   : > { %1335 = vmatpush3.bf16.msk.msra.mxu1 %vm1432_vm3, %v1330_v15 }
  0x50   : > { %1090 = vmatmul.mubr.msk.f32.vlgmr.msra.gmra.mrb[8].mxu0 %vm184_vm0, %v1389_v0 }
  0x51   : > { %796 = vmatprep.mubr.f32.mxu0 %v1358_v1 }
  0x52   : > { %1202 = vmatmul.mubr.msk.f32.vlgmr.msra.gmra.mrb[4].mxu1 %vm184_vm0, %v1457_v61 }
  0x54   : > { %1091 = vmatmul.mubr.msk.f32.gmra.mrb[10].mxu0 %vm184_vm0, %v1457_v61 }
  0xfb   : > { %v1552_v17 = vpop.f32.mrb[0].mxu0 }
  0xfc   : > { %v1157_v18 = vpop.f32.mrb[0].mxu1  ;;  %v1554_v19 = vpop.f32.mrb[1].mxu0  ;;  %v356_v20 = vrot.slane %v1552_v17, 3  ;;  %v376_v24 = vrot.slane %v1552_v17, 6 }
  0xfd   : > { %v383_v45 = vrot.slane %v1157_v18, 6  ;;  %v344_v21 = vpop.f32.mrb[1].mxu1  ;;  %v400_v22 = vrot.slane %v1157_v18, 1  ;;  %v379_v27 = vrot.slane %v1554_v19, 6  ;;  %v357_v31 = vrot.slane %v1554_v19, 3 }
  0xfe   : > { %v382_v0 = vrot.slane %v344_v21, 6  ;;  %359 = vrot.lane.b32.xlu0 %v356_v20, %s1360_s20  ;;  %v358_v1 = vrot.slane %v344_v21, 3 }
  0xff   : > { %v273_v23 = vpop.f32.mrb[2].mxu0 }
 0x100   : > { %363 = vrot.lane.b32.xlu1 %v358_v1, %s1360_s20  ;;  %v377_v61 = vrot.slane %v273_v23, 6  ;;  %v275_v25 = vpop.f32.mrb[3].mxu0  ;;  %v384_v26 = vsel %vm375_vm4, %v382_v0, %v383_v45  ;;  %v398_v32 = vrot.slane %v273_v23, 1 }
 0x101   : > { %v380_v28 = vrot.slane %v275_v25, 6  ;;  %v399_v33 = vrot.slane %v275_v25, 1 }
 0x102   : > { %405 = vrot.lane.b32.xlu0 %v400_v22, %s1361_s21  ;;  %v378_v29 = vsel %vm375_vm4, %v376_v24, %v377_v61 }
 0x103   : > { %v381_v30 = vsel %vm375_vm4, %v379_v27, %v380_v28 }
 0x104   : > { %389 = vrot.lane.b32.xlu1 %v384_v26, %s1362_s22 }
 0x106   : > { %361 = vrot.lane.b32.xlu0 %v357_v31, %s1360_s20 }
 0x108   : > { %385 = vrot.lane.b32.xlu1 %v378_v29, %s1362_s22 }
 0x10a   : > { %401 = vrot.lane.b32.xlu0 %v398_v32, %s1361_s21 }
 0x10c   : > { %403 = vrot.lane.b32.xlu1 %v399_v33, %s1361_s21 }
 0x10e   : > { %387 = vrot.lane.b32.xlu0 %v381_v30, %s1362_s22 }
 0x10f   : > { %v1572_v34 = vpop.f32.mrb[4].mxu0 }
 0x110   : > { %v620_v35 = vrot.slane %v1572_v34, 3  ;;  %v1575_v36 = vpop.f32.mrb[5].mxu0  ;;  %v638_v44 = vrot.slane %v1572_v34, 6 }
 0x111   : > { %v621_v37 = vrot.slane %v1575_v36, 3  ;;  %v1180_v38 = vpop.f32.mrb[2].mxu1  ;;  %v641_v48 = vrot.slane %v1575_v36, 6 }
 0x112   : > { %v645_v39 = vrot.slane %v1180_v38, 6  ;;  %v661_v40 = vrot.slane %v1180_v38, 1  ;;  %623 = vrot.lane.b32.xlu1 %v620_v35, %s1360_s20  ;;  %v608_v41 = vpop.f32.mrb[3].mxu1 }
 0x113   : > { %v537_v42 = vpop.f32.mrb[6].mxu0  ;;  %v644_v43 = vrot.slane %v608_v41, 6  ;;  %625 = vrot.lane.b32.xlu0 %v621_v37, %s1360_s20  ;;  %v622_v53 = vrot.slane %v608_v41, 3 }
 0x114   : > { %v639_v46 = vrot.slane %v537_v42, 6  ;;  %v539_v47 = vpop.f32.mrb[7].mxu0  ;;  %v659_v54 = vrot.slane %v537_v42, 1 }
 0x115   : > { %v642_v49 = vrot.slane %v539_v47, 6  ;;  %v646_v50 = vsel %vm375_vm4, %v644_v43, %v645_v39  ;;  %v660_v55 = vrot.slane %v539_v47, 1 }
 0x116   : > { %666 = vrot.lane.b32.xlu1 %v661_v40, %s1361_s21  ;;  %v640_v51 = vsel %vm375_vm4, %v638_v44, %v639_v46 }
 0x117   : > { %651 = vrot.lane.b32.xlu0 %v646_v50, %s1362_s22  ;;  %v643_v52 = vsel %vm375_vm4, %v641_v48, %v642_v49 }
 0x11a   : > { %627 = vrot.lane.b32.xlu1 %v622_v53, %s1360_s20 }
 0x11b   : > { %647 = vrot.lane.b32.xlu0 %v640_v51, %s1362_s22 }
 0x11e   : > { %662 = vrot.lane.b32.xlu1 %v659_v54, %s1361_s21 }
 0x11f   : > { %664 = vrot.lane.b32.xlu0 %v660_v55, %s1361_s21 }
 0x122   : > { %649 = vrot.lane.b32.xlu1 %v643_v52, %s1362_s22 }
 0x123   : > { %v1592_v56 = vpop.f32.mrb[8].mxu0 }
 0x124   : > { %v881_v57 = vrot.slane %v1592_v56, 3  ;;  %v1595_v58 = vpop.f32.mrb[9].mxu0  ;;  %v899_v5 = vrot.slane %v1592_v56, 6 }
 0x125   : > { %v882_v59 = vrot.slane %v1595_v58, 3  ;;  %v1203_v60 = vpop.f32.mrb[4].mxu1  ;;  %v902_v8 = vrot.slane %v1595_v58, 6 }
 0x126   : > { %v906_v62 = vrot.slane %v1203_v60, 6  ;;  %v869_v63 = vpop.f32.mrb[5].mxu1  ;;  %884 = vrot.lane.b32.xlu0 %v881_v57, %s1360_s20  ;;  %v922_v15 = vrot.slane %v1203_v60, 1 }
 0x127   : > { %v883_v2 = vrot.slane %v869_v63, 3  ;;  %v905_v3 = vrot.slane %v869_v63, 6  ;;  %v798_v4 = vpop.f32.mrb[10].mxu0  ;;  %886 = vrot.lane.b32.xlu1 %v882_v59, %s1360_s20 }
 0x128   : > { %v900_v6 = vrot.slane %v798_v4, 6  ;;  %v800_v7 = vpop.f32.mrb[11].mxu0  ;;  %v920_v11 = vrot.slane %v798_v4, 1 }
 0x129   : > { %v903_v9 = vrot.slane %v800_v7, 6  ;;  %v907_v10 = vsel %vm375_vm4, %v905_v3, %v906_v62  ;;  %v921_v14 = vrot.slane %v800_v7, 1 }
 0x12a   : > { %888 = vrot.lane.b32.xlu0 %v883_v2, %s1360_s20  ;;  %v901_v12 = vsel %vm375_vm4, %v899_v5, %v900_v6 }
 0x12b   : > { %912 = vrot.lane.b32.xlu1 %v907_v10, %s1362_s22  ;;  %v904_v13 = vsel %vm375_vm4, %v902_v8, %v903_v9 }
 0x12e   : > { %923 = vrot.lane.b32.xlu0 %v920_v11, %s1361_s21 }
 0x12f   : > { %908 = vrot.lane.b32.xlu1 %v901_v12, %s1362_s22 }
 0x132   : > { %910 = vrot.lane.b32.xlu0 %v904_v13, %s1362_s22 }
 0x133   : > { %925 = vrot.lane.b32.xlu1 %v921_v14, %s1361_s21 }
 0x136   : > { %927 = vrot.lane.b32.xlu0 %v922_v15, %s1361_s21 }
 0x170   : > { %v360_v16 = vpop.permute.xlu0 %359 }
 0x172   : > { %v364_v18 = vpop.permute.xlu1 %363 }
 0x174   : > { %v406_v20 = vpop.permute.xlu0 %405 }
 0x176   : > { %v390_v45 = vpop.permute.xlu1 %389 }
 0x178   : > { %v362_v21 = vpop.permute.xlu0 %361 }
 0x179   : > { %v366_v1 = vsel %vm365_vm5, %v360_v16, %v362_v21  ;;  %v367_v23 = vsel %vm365_vm5, %v362_v21, %v364_v18 }
 0x17a   : > { %v386_v22 = vpop.permute.xlu1 %385  ;;  %v370_v24 = vadd.f32 %v366_v1, %v1552_v17  ;;  %v371_v61 = vadd.f32 %v367_v23, %v1554_v19 }
 0x17c   : > { %v402_v0 = vpop.permute.xlu0 %401 }
 0x17e   : > { %v404_v25 = vpop.permute.xlu1 %403 }
 0x17f   : > { %v408_v31 = vsel %vm407_vm7, %v402_v0, %v404_v25  ;;  %v409_v32 = vsel %vm407_vm7, %v404_v25, %v406_v20 }
 0x180   : > { %v388_v26 = vpop.permute.xlu0 %387 }
 0x181   : > { %v392_v27 = vsel %vm391_vm6, %v386_v22, %v388_v26  ;;  %v393_v28 = vsel %vm391_vm6, %v388_v26, %v390_v45 }
 0x182   : > { %v396_v29 = vadd.f32 %v392_v27, %v370_v24  ;;  %v397_v30 = vadd.f32 %v393_v28, %v371_v61 }
 0x184   : > { %v412_v33 = vadd.f32 %v408_v31, %v396_v29  ;;  %v413_v35 = vadd.f32 %v409_v32, %v397_v30  ;;  %v624_v37 = vpop.permute.xlu1 %623 }
 0x185   : > { %v626_v17 = vpop.permute.xlu0 %625 }
 0x186   : > { %vm414_vm8 = vcmp.gt.f32.partialorder %v412_v33, 0.0  ;;  %vm415_vm9 = vcmp.gt.f32.partialorder %v413_v35, 0.0  ;;  %v416_v19 = vmul.f32 -0.25, %v412_v33  ;;  %v417_v38 = vmul.f32 -0.25, %v413_v35 }
 0x187   : > { %v629_v48 = vsel %vm365_vm5, %v624_v37, %v626_v17 }
 0x188   : > { %v418_v39 = vsel %vm414_vm8, %v412_v33, %v416_v19  ;;  %v419_v40 = vsel %vm415_vm9, %v413_v35, %v417_v38  ;;  %v667_v41 = vpop.permute.xlu1 %666  ;;  %v633_v50 = vadd.f32 %v629_v48, %v1572_v34 }
 0x189   : > { %v422_v42 = vcombine.low %v418_v39, %v419_v40  ;;  %v652_v43 = vpop.permute.xlu0 %651 }
 0x18b   : > { %424 = vst [vmem:[%s1624_s26] sm:$0x77] %v422_v42 }
 0x18c   : > { %v628_v44 = vpop.permute.xlu1 %627 }
 0x18d   : > { %v648_v46 = vpop.permute.xlu0 %647  ;;  %v630_v49 = vsel %vm365_vm5, %v626_v17, %v628_v44 }
 0x18e   : > { %v634_v51 = vadd.f32 %v630_v49, %v1575_v36 }
 0x190   : > { %v663_v47 = vpop.permute.xlu1 %662 }
 0x191   : > { %v665_v52 = vpop.permute.xlu0 %664 }
 0x192   : > { %v668_v60 = vsel %vm407_vm7, %v663_v47, %v665_v52  ;;  %v669_v62 = vsel %vm407_vm7, %v665_v52, %v667_v41 }
 0x194   : > { %v650_v53 = vpop.permute.xlu1 %649 }
 0x195   : > { %v653_v54 = vsel %vm391_vm6, %v648_v46, %v650_v53  ;;  %v654_v55 = vsel %vm391_vm6, %v650_v53, %v652_v43 }
 0x196   : > { %v657_v57 = vadd.f32 %v653_v54, %v633_v50  ;;  %v658_v59 = vadd.f32 %v654_v55, %v634_v51 }
 0x198   : > { %v672_v63 = vadd.f32 %v668_v60, %v657_v57  ;;  %v673_v2 = vadd.f32 %v669_v62, %v658_v59  ;;  %v885_v3 = vpop.permute.xlu0 %884 }
 0x199   : > { %v887_v4 = vpop.permute.xlu1 %886 }
 0x19a   : > { %vm674_vm10 = vcmp.gt.f32.partialorder %v672_v63, 0.0  ;;  %vm675_vm11 = vcmp.gt.f32.partialorder %v673_v2, 0.0  ;;  %v676_v34 = vmul.f32 -0.25, %v672_v63  ;;  %v677_v36 = vmul.f32 -0.25, %v673_v2 }
 0x19b   : > { %v890_v11 = vsel %vm365_vm5, %v885_v3, %v887_v4 }
 0x19c   : > { %v678_v5 = vsel %vm674_vm10, %v672_v63, %v676_v34  ;;  %v679_v6 = vsel %vm675_vm11, %v673_v2, %v677_v36  ;;  %v889_v7 = vpop.permute.xlu0 %888  ;;  %v894_v14 = vadd.f32 %v890_v11, %v1592_v56 }
 0x19d   : > { %v682_v8 = vcombine.low %v678_v5, %v679_v6  ;;  %v913_v9 = vpop.permute.xlu1 %912  ;;  %v891_v13 = vsel %vm365_vm5, %v887_v4, %v889_v7 }
 0x19e   : > { %v895_v45 = vadd.f32 %v891_v13, %v1595_v58 }
 0x19f   : > { %1057 = vst [vmem:[%s1624_s26 + $0x8] sm:$0x77] %v682_v8 }
 0x1a0   : > { %v924_v10 = vpop.permute.xlu0 %923 }
 0x1a1   : > { %v909_v12 = vpop.permute.xlu1 %908 }
 0x1a4   : > { %v911_v15 = vpop.permute.xlu0 %910 }
 0x1a5   : > { %v914_v16 = vsel %vm391_vm6, %v909_v12, %v911_v15  ;;  %v915_v18 = vsel %vm391_vm6, %v911_v15, %v913_v9  ;;  %v926_v20 = vpop.permute.xlu1 %925 }
 0x1a6   : > { %v918_v21 = vadd.f32 %v914_v16, %v894_v14  ;;  %v929_v22 = vsel %vm407_vm7, %v924_v10, %v926_v20  ;;  %v919_v0 = vadd.f32 %v915_v18, %v895_v45 }
 0x1a8   : > { %v933_v1 = vadd.f32 %v929_v22, %v918_v21  ;;  %v928_v23 = vpop.permute.xlu0 %927 }
 0x1a9   : > { %v930_v24 = vsel %vm407_vm7, %v926_v20, %v928_v23 }
 0x1aa   : > { %v937_v61 = vmul.f32 -0.25, %v933_v1  ;;  %v934_v25 = vadd.f32 %v930_v24, %v919_v0  ;;  %vm935_vm12 = vcmp.gt.f32.partialorder %v933_v1, 0.0 }
 0x1ac   : > { %vm936_vm13 = vcmp.gt.f32.partialorder %v934_v25, 0.0  ;;  %v938_v56 = vmul.f32 -0.25, %v934_v25  ;;  %v939_v26 = vsel %vm935_vm12, %v933_v1, %v937_v61 }
 0x1ae   : > { %v940_v27 = vsel %vm936_vm13, %v934_v25, %v938_v56 }
 0x1af   : > { %v943_v28 = vcombine.low %v939_v26, %v940_v27 }
 0x1b1   : > { %1095 = vst [vmem:[%s1624_s26 + $0x10] sm:$0x77] %v943_v28 }
 0x1b2 PF: > { %s12_s9 = sadd.s32 1, %s1356_s9  }
 0x1b3   : > { %p9_p4 = scmp.ge.s32.totalorder %s12_s9, 4  }
 0x1b5   :  { %11 = sbr.rel (!%p9_p4) target bundleno = 1 (0x1), region = 62 }

</bundles_post_ra>
